<compile_context>
chip_gen: v6e
topology: v6e:2x2x1
jax: 0.10.0
libtpu: 0.0.40
codegen_flags: <defaults>
</compile_context>

<pallas_src>
import jax
import jax.numpy as jnp
from jax.experimental import pallas as pl
from jax.experimental.pallas import tpu as pltpu


def _round_up(x: int, m: int) -> int:
    return ((x + m - 1) // m) * m


def _chomp_copy_kernel(x_ref, o_ref):
    # x_ref block: (TR, TL_in), o_ref block: (TR, TL_out) with TL_out <= TL_in.
    # NOTE: the (static) slice below is what keeps the ragged last column tile
    # correct -- the input block may read columns in [l_out, block_end)
    # (chomped-but-valid data, or clamped garbage past L) and the masked output
    # writeback discards them.  Do not consume those lanes in added compute.
    o_ref[...] = x_ref[:, : o_ref.shape[1]]


def chomp1d(x: jax.Array, chomp_size: int, *,
            target_block_bytes: int = 2 * 1024 * 1024,
            min_segment_bytes: int = 4096) -> jax.Array:
    """Pallas implementation of Chomp1d.forward: x[:, :, :-chomp_size]."""
    assert chomp_size > 0, "chomp_size must be positive (matches PyTorch usage)"
    n, c, l = x.shape
    l_out = l - chomp_size
    assert l_out > 0, "chomp_size must be smaller than the sequence length"

    # Tiny-width path: lane-dense stores are impossible (l_out < 128), so skip
    # the VMEM round-trip entirely and let XLA do the slice (review item).
    if l_out < 128:
        return jax.lax.slice(x, (0, 0, 0), (n, c, l_out))

    # Flatten batch x channels into rows (free reshape of contiguous dims).
    r = n * c
    x2 = x.reshape(r, l)
    itemsize = jnp.dtype(x.dtype).itemsize

    # ---- Column (lane) tiling: balanced, dtype-scaled, 128-multiples. ----
    # Keep each per-row HBM segment >= min_segment_bytes for narrow dtypes.
    lane_tile = max(128, min_segment_bytes // itemsize)   # always a 128-multiple
    n_cols = pl.cdiv(l_out, lane_tile)
    tl = _round_up(pl.cdiv(l_out, n_cols), 128)           # balanced tile width
    n_cols = pl.cdiv(l_out, tl)
    collapsed = (n_cols == 1)

    if collapsed:
        # Input block: 128-multiple, or the full input width if that is smaller
        # (both are legal block shapes).  Output block: the full l_out width,
        # so each output step is one contiguous HBM slab.
        tl_in = min(_round_up(l_out, 128), l)
        tl_out = l_out
    else:
        tl_in = tl
        tl_out = tl

    # ---- Row (sublane) tiling: ~target_block_bytes per block. ----
    tr_cap = max(8, target_block_bytes // (tl_in * itemsize))
    tr = r if r <= tr_cap else max(8, (tr_cap // 8) * 8)
    n_rows = pl.cdiv(r, tr)

    # ---- Never leave a (1, 1) grid if it can be split (v7x: 2 TensorCores). ----
    if n_rows == 1 and n_cols == 1:
        if r > 8:
            tr = _round_up(pl.cdiv(r, 2), 8)
            n_rows = pl.cdiv(r, tr)
        elif l_out >= 256:
            tl = _round_up(pl.cdiv(l_out, 2), 128)
            n_cols = pl.cdiv(l_out, tl)
            collapsed = False
            tl_in = tl_out = tl

    bytes_read = r * min(l, n_cols * tl_in) * itemsize
    bytes_written = r * l_out * itemsize
    cost = pl.CostEstimate(flops=0, transcendentals=0,
                           bytes_accessed=bytes_read + bytes_written)

    if collapsed:
        grid = (n_rows,)
        in_specs = [pl.BlockSpec((tr, tl_in), lambda i: (i, 0))]
        out_specs = pl.BlockSpec((tr, tl_out), lambda i: (i, 0))
        semantics = ("parallel",)
    else:
        grid = (n_rows, n_cols)
        in_specs = [pl.BlockSpec((tr, tl_in), lambda i, j: (i, j))]
        out_specs = pl.BlockSpec((tr, tl_out), lambda i, j: (i, j))
        semantics = ("parallel", "parallel")

    out2 = pl.pallas_call(
        _chomp_copy_kernel,
        out_shape=jax.ShapeDtypeStruct((r, l_out), x.dtype),
        grid_spec=pltpu.PrefetchScalarGridSpec(
            num_scalar_prefetch=0,
            grid=grid,
            in_specs=in_specs,
            out_specs=out_specs,
        ),
        compiler_params=pltpu.CompilerParams(dimension_semantics=semantics),
        cost_estimate=cost,
    )(x2)

    return out2.reshape(n, c, l_out)


if __name__ == "__main__":
    key = jax.random.PRNGKey(0)
    k1, k2, k3, k4 = jax.random.split(key, 4)

    # Case 1: tiny TCN shape (batch=2, channels=4, seq=16, chomp=3).
    # l_out = 13 < 128 -> XLA-slice fallback path.
    x_small = jax.random.normal(k1, (2, 4, 16), dtype=jnp.float32)
    out_small = jax.block_until_ready(chomp1d(x_small, 3))
    ref_small = x_small[:, :, :-3]
    assert out_small.shape == ref_small.shape and out_small.dtype == ref_small.dtype
    assert jnp.array_equal(out_small, ref_small), "Chomp1d mismatch (small / fallback)"

    # Case 2: l_out = 256 -> collapsed 1-D row grid (contiguous output slabs),
    # forced to 2 row tiles so both v7x TensorCores get work.
    x_mid = jax.random.normal(k2, (2, 8, 300), dtype=jnp.float32)
    out_mid = jax.block_until_ready(chomp1d(x_mid, 44))
    ref_mid = x_mid[:, :, :-44]
    assert out_mid.shape == ref_mid.shape and out_mid.dtype == ref_mid.dtype
    assert jnp.array_equal(out_mid, ref_mid), "Chomp1d mismatch (mid / collapsed)"

    # Case 3: l_out = 1040 -> balanced 2-D tiling (two 640-wide column tiles
    # instead of 1024 + 16), ragged edge on both refs.
    x_long = jax.random.normal(k3, (2, 8, 1100), dtype=jnp.float32)
    out_long = jax.block_until_ready(chomp1d(x_long, 60))
    ref_long = x_long[:, :, :-60]
    assert out_long.shape == ref_long.shape and out_long.dtype == ref_long.dtype
    assert jnp.array_equal(out_long, ref_long), "Chomp1d mismatch (long / tiled)"

    # Case 4: bf16 -> dtype-scaled lane tile (2048 elems) collapses to one
    # column tile; input block capped at the full input width.
    x_bf16 = jax.random.normal(k4, (2, 8, 1100), dtype=jnp.bfloat16)
    out_bf16 = jax.block_until_ready(chomp1d(x_bf16, 60))
    ref_bf16 = x_bf16[:, :, :-60]
    assert out_bf16.shape == ref_bf16.shape and out_bf16.dtype == ref_bf16.dtype
    assert jnp.array_equal(out_bf16, ref_bf16), "Chomp1d mismatch (bf16)"

    print("KERNEL_OK")
</pallas_src>

<mosaic_0001>
module attributes {stable_mosaic.version = 11 : i64} {
  func.func @_chomp_copy_kernel(%arg0: i32, %arg1: memref<8x256xf32, #tpu.memory_space<vmem>>, %arg2: memref<8x256xf32, #tpu.memory_space<vmem>>) attributes {dimension_semantics = [#tpu.dimension_semantics<parallel>], iteration_bounds = array<i64: 2>, scalar_prefetch = 0 : i64, scratch_operands = 0 : i64, tpu.core_type = #tpu.core_type<tc>, window_params = [{transform_indices = @transform_0, window_bounds = array<i64: 8, 256>}, {transform_indices = @transform_1, window_bounds = array<i64: 8, 256>}]} {
    %c0 = arith.constant 0 : index
    %c0_0 = arith.constant 0 : index
    %0 = vector.load %arg1[%c0, %c0_0] : memref<8x256xf32, #tpu.memory_space<vmem>>, vector<8x256xf32>
    %c0_1 = arith.constant 0 : index
    %c0_2 = arith.constant 0 : index
    %1 = vector.load %arg2[%c0_1, %c0_2] : memref<8x256xf32, #tpu.memory_space<vmem>>, vector<8x256xf32>
    tpu.vector_store %arg2[%c0_1, %c0_2], %0 {strides = array<i32>} : memref<8x256xf32, #tpu.memory_space<vmem>>, vector<8x256xf32>,
    return
  }
  func.func @transform_0(%arg0: i32) -> (i32, i32) {
    %c0_i32 = arith.constant 0 : i32
    %c0_i32_0 = arith.constant 0 : i32
    return %arg0, %c0_i32 : i32, i32
  }
  func.func @transform_1(%arg0: i32) -> (i32, i32) {
    %c0_i32 = arith.constant 0 : i32
    %c0_i32_0 = arith.constant 0 : i32
    return %arg0, %c0_i32 : i32, i32
  }
}

</mosaic_0001>

<bundles_post_ra>
// kernel: tpu_custom_call.1
= control target key start
LH: loop header
LB: loop body
LE: loop exit
PB: predicated region body
PF: predicated region fallthrough
CT: control target
= control target key end

     0   :  { %6 = vsyncpa [#allocation3], 0  ;;  %s542_s0 = inlined_call_operand.hbm [shape: f32[16,300], index: 0, kind: input, shape index: {}]   ;;  %s543_s1 = inlined_call_operand.hbm [shape: f32[16,256], index: 1, kind: output, shape index: {}]  }
   0x1   :  { %8 = vsyncpa [#allocation3 + $0x1], 0 }
   0x2   :  { %9 = vsyncpa [#allocation4], 0 }
   0x3   :  { %11 = vsyncpa [#allocation4 + $0x1], 0  ;;  %s389_s6 = smov 0   ;;  %s391_s7 = smov 0  }
   0x4   :  { %s393_s8 = smov 0   ;;  %s395_s9 = smov 0  }
   0x5 LB: > { %s410_s10 = sadd.s32 4294967295, %s375_s9   ;;  %s222_s11 = sadd.s32 4294967294, %s375_s9   ;;  %s375_s9 = sphi %s395_s9, %s560_s9   ;;  %s371_s8 = sphi %s393_s8, %s559_s8   ;;  %s367_s7 = sphi %s391_s7, %s558_s7   ;;  %s363_s6 = sphi %s389_s6, %s557_s6  }
   0x6   : > { %s414_s12 = sadd.s32 1, %s375_s9   ;;  %s24_s13 = sadd.s32 1, %s371_s8 }
   0x7   : > { %s21_s14 = ssub.s32 %s375_s9, %s414_s12  ;;  %p31_p0 = scmp.ne.s32.totalorder %s371_s8, %s367_s7 }
   0x8   : > { %p22_p1 = scmp.eq.s32.totalorder %s21_s14, 0  ;;  %p32_p2 = scmp.eq.s32.totalorder %s375_s9, 0 }
   0x9   : > { %p37_p3 = scmp.ne.s32.totalorder %s367_s7, %s363_s6  ;;  %p38_p4 = scmp.eq.s32.totalorder %s410_s10, 0 }
   0xa   : > { %s426_s15 = scalar_select %p22_p1, %s371_s8, %s24_s13  }
   0xb   : > { %p428_p5 = por %p32_p2, %p31_p0  ;;  %p432_p6 = por %p38_p4, %p37_p3 }
   0xc   : > { %p61_p7 = scmp.eq.s32.totalorder %s410_s10, 1  ;;  %p67_p8 = scmp.eq.s32.totalorder %s222_s11, 1 }
   0xd   : > { %s547_s17 = scalar_select %p432_p6, 1, 0 }
   0xe   : > { %p249_p10 = scmp.lt.s32.totalorder %s375_s9, 2  ;;  %p439_p11 = por %p61_p7, %p31_p0 }
   0xf   : > { %p443_p12 = por %p67_p8, %p37_p3  ;;  %s87_s20 = sand.u32 1, %s371_s8  }
  0x10   : > { %s548_s18 = scalar_select %p439_p11, 1, 0 }
  0x11   : > { %s549_s19 = scalar_select %p443_p12, 1, 0 }
  0x12   : > { %s236_s21 = smul.u32 384, %s375_s9  ;;  %s225_s22 = sshll.u32 %s87_s20, 4 }
  0x13   : > { %s91_s26 = scalar_lea.vmem [#allocation2], %s225_s22  ;;  %p456_p13 = pnand %p249_p10, %p428_p5 }
  0x14   : > { %s452_s25 = scalar_lea.hbm %s542_s0, %s236_s21  ;;  %s99_s27 = sshll.u32 %s91_s26, 4  ;;  %s460_s27 = int_to_ptr.vmem [resolvable:$true] %s99_s27 }
  0x15   : > { %s88_s29 = scalar_lea.sflag [#allocation3], %s87_s20  ;;  %s283_s30 = scalar_lea.hbm %s452_s25, 256 }
  0x16   : > { %p284_p2 = scmp.ne.s32.totalorder %s452_s25, %s283_s30  ;;  %p285_p3 = pneg %p456_p13 }
  0x17   : > { %s288_s4 = scalar_lea.hbm %s542_s0, 768  ;;  %p289_p5 = scmp.lt.s32.totalorder %s452_s25, %s542_s0 }
  0x18   : > { %p286_p4 = pnand %p285_p3, %p284_p2  ;;  %p290_p8 = scmp.lt.s32.totalorder %s288_s4, %s283_s30 }
  0x1a   : > { %p287_p7 = pneg %p286_p4  ;;  %p291_p10 = por %p290_p8, %p289_p5 }
  0x1c   : > { %p292_p9 = pnand %p291_p10, %p287_p7 }
  0x1e   : > { %295 = shalt.err (!%p292_p9)
}
  0x1f   : > { %s296_s13 = scalar_lea.vmem %s460_s27, 256  ;;  %s377_s14 = smov [#allocation2]  }
  0x20   : > { %p297_p0 = scmp.ne.s32.totalorder %s460_s27, %s296_s13  ;;  %s301_s16 = sshll.u32 %s377_s14, 4  ;;  %s302_s16 = int_to_ptr.vmem [resolvable:$false] %s301_s16 }
  0x21   : > { %s303_s20 = scalar_lea.vmem %s302_s16, 512  ;;  %p304_p4 = scmp.lt.s32.totalorder %s460_s27, %s302_s16 }
  0x22   : > { %p299_p1 = pnand %p297_p0, %p285_p3  ;;  %p305_p12 = scmp.lt.s32.totalorder %s303_s20, %s296_s13 }
  0x24   : > { %p300_p2 = pneg %p299_p1  ;;  %p306_p11 = por %p305_p12, %p304_p4 }
  0x26   : > { %p307_p6 = pnand %p306_p11, %p300_p2 }
  0x28   : > { %310 = shalt.err (!%p307_p6)
}
  0x29   : > { %244 = dma.hbm_to_vmem [thread:$0]  (!%p456_p13), %s452_s25, 256, %s460_s27, %s88_s29  }
  0x2a   : > { %p551_p9 = scmp.lt.s32.totalorder %s375_s9, 3  ;;  %p552_p7 = scmp.ge.s32.totalorder %s375_s9, 1 }
  0x2c   : > { %p105_p0 = pnand %p552_p7, %p551_p9 }
  0x2d   : > { %s487_s21 = sand.u32 (!%p105_p0), 1, %s367_s7   ;;  %p553_p6 = scmp.ne.s32.totalorder (!%p105_p0), %s547_s17, 0 }
  0x2e   : > { %108 = sbr.rel (%p105_p0) target bundleno = 77 (0x4d), region = 24  ;;  %s228_s22 = sshll.u32 (!%p105_p0), %s487_s21, 4 }
  0x2f   : > { %s111_s23 = scalar_lea.sflag (!%p105_p0), [#allocation3], %s487_s21  ;;  %s114_s24 = scalar_lea.vmem (!%p105_p0), [#allocation2], %s228_s22 }
  0x33   : > { %354 = dma.done.wait (%p553_p6), %s111_s23, 256  }
  0x34   : > { %356 = vsyncadd (%p553_p6), %s111_s23, 4294967040  ;;  %s132_s25 = scalar_lea.vmem [#allocation5], %s228_s22  ;;  %s235_s27 = sshll.u32 %s410_s10, 8  ;;  %v133_v0 = vld [vmem:[%s114_s24] sm:$0xff]  ;;  %v134_v1 = vld [vmem:[%s114_s24 + $0x8] sm:$0xff] }
  0x35   : > { %s152_s26 = sshll.u32 %s132_s25, 4  ;;  %s501_s30 = scalar_lea.hbm %s543_s1, %s235_s27  ;;  %135 = vst [vmem:[%s132_s25] sm:$0xff] %v133_v0  ;;  %136 = vst [vmem:[%s132_s25 + $0x8] sm:$0xff] %v134_v1  ;;  %s496_s26 = int_to_ptr.vmem [resolvable:$true] %s152_s26 }
  0x36   : > { %s138_s17 = scalar_lea.sflag [#allocation4], %s487_s21  ;;  %s311_s2 = scalar_lea.vmem %s496_s26, 256 }
  0x37   : > { %p312_p11 = scmp.ne.s32.totalorder %s496_s26, %s311_s2  ;;  %p554_p12 = scmp.ne.s32.totalorder %s548_s18, 0 }
  0x38   : > { %s378_s10 = smov [#allocation5]  }
  0x39   : > { %p313_p13 = pnand %p312_p11, %p554_p12  ;;  %s315_s3 = sshll.u32 %s378_s10, 4  ;;  %s316_s3 = int_to_ptr.vmem [resolvable:$false] %s315_s3 }
  0x3a   : > { %s317_s4 = scalar_lea.vmem %s316_s3, 512  ;;  %p318_p3 = scmp.lt.s32.totalorder %s496_s26, %s316_s3 }
  0x3b   : > { %p314_p1 = pneg %p313_p13  ;;  %p319_p5 = scmp.lt.s32.totalorder %s317_s4, %s311_s2 }
  0x3d   : > { %p320_p8 = por %p319_p5, %p318_p3 }
  0x3f   : > { %p321_p10 = pnand %p320_p8, %p314_p1 }
  0x41   : > { %324 = shalt.err (!%p321_p10)
}
  0x42   : > { %s325_s5 = scalar_lea.hbm %s501_s30, 256  ;;  %s329_s14 = scalar_lea.hbm %s543_s1, 512 }
  0x43   : > { %p326_p2 = scmp.ne.s32.totalorder %s501_s30, %s325_s5  ;;  %p330_p7 = scmp.lt.s32.totalorder %s501_s30, %s543_s1 }
  0x44   : > { %p331_p0 = scmp.lt.s32.totalorder %s329_s14, %s325_s5 }
  0x45   : > { %p327_p4 = pnand %p326_p2, %p554_p12 }
  0x46   : > { %p332_p6 = por %p331_p0, %p330_p7 }
  0x47   : > { %p328_p9 = pneg %p327_p4 }
  0x49   : > { %p333_p11 = pnand %p332_p6, %p328_p9 }
  0x4b   : > { %336 = shalt.err (!%p333_p11)
}
  0x4c   : > { %239 = dma.vmem_to_hbm [thread:$0]  (%p554_p12), %s496_s26, 256, %s501_s30, %s138_s17  }
  0x4d PF: > { %s164_s21 = sand.u32 1, %s363_s6   ;;  %p555_p13 = scmp.ne.s32.totalorder %s549_s19, 0 }
  0x4e   : > { %p556_p1 = scmp.ge.s32.totalorder %s375_s9, 2  ;;  %s165_s22 = scalar_lea.sflag [#allocation4], %s164_s21 }
  0x50   : > { %p246_p3 = pnand %p556_p1, %p555_p13 }
  0x52   : > { %p247_p5 = pneg %p246_p3 }
  0x54   : > { %358 = dma.done.wait (%p247_p5), %s165_s22, 256  }
  0x55   : > { %360 = vsyncadd (%p247_p5), %s165_s22, 4294967040  ;;  %p14_p8 = scmp.ge.s32.totalorder %s414_s12, 4   ;;  %s557_s6 = smov %s367_s7 }
  0x56   : > { %s558_s7 = smov %s371_s8  ;;  %s559_s8 = smov %s426_s15 }
  0x57   : > { %s560_s9 = smov %s414_s12  ;;  %16 = sbr.rel (!%p14_p8) target bundleno = 5 (0x5), region = 69 }
  0x5c   :  { %170 = vsyncpa [#allocation3], 1 }
  0x5d   :  { %172 = vsyncpa [#allocation3 + $0x1], 1 }
  0x5e   :  { %173 = vsyncpa [#allocation4], 1 }
  0x5f   :  { %175 = vsyncpa [#allocation4 + $0x1], 1 }

</bundles_post_ra>
